<compile_context>
chip_gen: v7x
topology: tpu7x:2x2x1
jax: 0.10.0
libtpu: 0.0.40
codegen_flags: <defaults>
</compile_context>

<pallas_src>
import functools

import jax
import jax.numpy as jnp
from jax.experimental import pallas as pl
from jax.experimental.pallas import tpu as pltpu


def _dsconv_kernel(x_ref, wdw_ref, wpw_ref, o_ref, *, K, TH, Wo, C, Cout):
    # x_ref:   (1, C, H_pad, W)    VMEM  full (padded) image, resident across h steps
    # wdw_ref: (C*K*K,)            SMEM  depthwise taps, index c*K*K + kh*K + kw
    # wpw_ref: (C, Cout*Wo)        VMEM  lane-constant pointwise weights (lane co*Wo + w)
    # o_ref:   (1, 1, TH, Cout*Wo) VMEM  lane-dense output tile (rows [h*TH, h*TH+TH))
    h = pl.program_id(1)
    row0 = h * TH
    CW = Cout * Wo

    # Single lane-packed f32 accumulator: lane segment co holds output channel co.
    y = jnp.zeros((TH, CW), jnp.float32)

    for c in range(C):
        # Depthwise conv for channel c: scalar(SMEM) x vector VPU MACs.
        # One (TH, W) row-slab load per kh; the kw shifts are static in-vreg
        # lane slices of the loaded value (no extra VMEM loads per kw).
        dw = jnp.zeros((TH, Wo), jnp.float32)
        for kh in range(K):
            slab = x_ref[0, c, pl.ds(row0 + kh, TH), :].astype(jnp.float32)
            for kw in range(K):
                dw = dw + slab[:, kw:kw + Wo] * wdw_ref[c * K * K + kh * K + kw]
        # Fused pointwise (1x1) conv: lane-replicate the depthwise plane across
        # the Cout segments and do a single near-full-lane MAC per input channel.
        rep = jnp.concatenate([dw] * Cout, axis=1)           # (TH, Cout*Wo)
        y = y + rep * wpw_ref[pl.ds(c, 1), :]                # (1, CW) bcast over rows

    # One lane-dense store (Cout*Wo lanes) instead of Cout masked stores.
    o_ref[0, 0, :, :] = y.astype(o_ref.dtype)


def _default_tile_h(Ho, N, cap=32):
    """Row-tile heuristic: divisor of Ho when possible (no pad), vreg-capped."""
    if Ho <= cap:
        if N >= 2 or Ho < 4:
            return Ho
        # N == 1: split so the v7x megacore (2 TCs) gets >= 2 grid steps,
        # preferring an exact divisor of Ho so no wrapper pad is needed.
        for t in range((Ho + 1) // 2, 1, -1):
            if Ho % t == 0:
                return t
        return Ho
    for t in range(cap, 7, -1):          # largest divisor of Ho in [8, cap]
        if Ho % t == 0:
            return t
    return cap                           # ragged: wrapper pads H


def depthwise_separable_conv2d(x_nchw, w_dw, w_pw, *, tile_h=None, vmem_limit_bytes=None):
    """x_nchw: (N, C, H, W); w_dw: (C, 1, K, K); w_pw: (Cout, C, 1, 1)."""
    N, C, H, W = x_nchw.shape
    K = w_dw.shape[-1]
    Cout = w_pw.shape[0]
    assert w_dw.shape == (C, 1, K, K), w_dw.shape
    assert w_pw.shape == (Cout, C, 1, 1), w_pw.shape
    Ho, Wo = H - K + 1, W - K + 1
    CW = Cout * Wo

    if tile_h is None:
        tile_h = _default_tile_h(Ho, N)
    tile_h = max(1, min(tile_h, Ho))
    n_h = pl.cdiv(Ho, tile_h)

    # Pad H only for ragged tilings (divisor tile_h -> no pad -> no extra HBM pass).
    h_need = n_h * tile_h + K - 1
    if h_need > H:
        # TODO(synk): handle the ragged last h-tile in-kernel (clamped row0)
        # to avoid this extra HBM round trip on bandwidth-poor v5e.
        x_nchw = jnp.pad(x_nchw, ((0, 0), (0, 0), (0, h_need - H), (0, 0)))
    H_pad = x_nchw.shape[2]

    # Depthwise taps as SMEM scalars (index c*K*K + kh*K + kw); pointwise
    # weights pre-broadcast (once, in the wrapper) to lane-constant segments.
    wdw_flat = w_dw[:, 0, :, :].astype(jnp.float32).reshape(C * K * K)
    pw = w_pw[:, :, 0, 0].astype(jnp.float32)                  # (Cout, C)
    wpw_lane = jnp.repeat(pw.T, Wo, axis=1)                    # (C, Cout*Wo), [c, co*Wo+w]

    kernel = functools.partial(_dsconv_kernel, K=K, TH=tile_h, Wo=Wo, C=C, Cout=Cout)

    itemsize = x_nchw.dtype.itemsize
    in_block = C * H_pad * W * itemsize
    out_block = tile_h * CW * itemsize
    footprint = 2 * in_block + 2 * out_block + 2 * (C * CW * 4)
    if vmem_limit_bytes is None:
        # ~4x actual buffer footprint, clamped to the v7x physical budget.
        vmem_limit_bytes = int(min(64 << 20, max(4 << 20, 4 * footprint)))

    cost = pl.CostEstimate(
        flops=2 * N * Ho * Wo * C * (K * K + Cout),
        transcendentals=0,
        bytes_accessed=int(N * in_block + N * Cout * Ho * Wo * itemsize
                           + C * K * K * 4 + C * CW * 4),
    )

    out = pl.pallas_call(
        kernel,
        out_shape=jax.ShapeDtypeStruct((N, n_h, tile_h, CW), x_nchw.dtype),
        grid_spec=pltpu.PrefetchScalarGridSpec(
            num_scalar_prefetch=0,
            grid=(N, n_h),
            in_specs=[
                # Full padded image per batch; constant block index along h ->
                # stays VMEM-resident across all h steps of a batch.
                # TODO(synk): for large images on v7x (64 MiB VMEM) switch to
                # H-tiled input blocks with a K-1 row halo.
                pl.BlockSpec((1, C, H_pad, W), lambda b, h: (b, 0, 0, 0)),
                pl.BlockSpec(memory_space=pltpu.MemorySpace.SMEM),
                pl.BlockSpec((C, CW), lambda b, h: (0, 0)),
            ],
            out_specs=pl.BlockSpec((1, 1, tile_h, CW), lambda b, h: (b, h, 0, 0)),
        ),
        compiler_params=pltpu.CompilerParams(
            dimension_semantics=("parallel", "parallel"),
            vmem_limit_bytes=vmem_limit_bytes),
        cost_estimate=cost,
    )(x_nchw, wdw_flat, wpw_lane)

    # Layout plumbing only: (N, n_h, TH, Cout*Wo) -> NCHW (N, Cout, Ho, Wo).
    out = out.reshape(N, n_h, tile_h, Cout, Wo)
    out = jnp.transpose(out, (0, 3, 1, 2, 4)).reshape(N, Cout, n_h * tile_h, Wo)
    return out[:, :, :Ho, :]


def _reference(x_nchw, w_dw, w_pw):
    # Pure-JAX reference with the exact PyTorch conv semantics (NCHW, OIHW).
    C = x_nchw.shape[1]
    dw = jax.lax.conv_general_dilated(
        x_nchw, w_dw, window_strides=(1, 1), padding="VALID",
        dimension_numbers=("NCHW", "OIHW", "NCHW"), feature_group_count=C)
    pw = jax.lax.conv_general_dilated(
        dw, w_pw, window_strides=(1, 1), padding="VALID",
        dimension_numbers=("NCHW", "OIHW", "NCHW"))
    return pw


def _run_case(N, C, H, W, K, Cout, tile_h, key):
    kx, kdw, kpw = jax.random.split(key, 3)
    x = jax.random.normal(kx, (N, C, H, W), dtype=jnp.float32)
    w_dw = jax.random.normal(kdw, (C, 1, K, K), dtype=jnp.float32) * 0.1     # depthwise
    w_pw = jax.random.normal(kpw, (Cout, C, 1, 1), dtype=jnp.float32) * 0.1  # pointwise

    out = jax.block_until_ready(depthwise_separable_conv2d(x, w_dw, w_pw, tile_h=tile_h))
    ref = jax.block_until_ready(_reference(x, w_dw, w_pw))

    assert out.shape == (N, Cout, H - K + 1, W - K + 1), out.shape
    err = float(jnp.max(jnp.abs(out - ref)))
    assert jnp.allclose(out, ref, atol=1e-5, rtol=1e-5), err
    return err


if __name__ == "__main__":
    key = jax.random.PRNGKey(0)
    k1, k2, k3 = jax.random.split(key, 3)

    # Module-implied shapes: batch=2, channels=4, spatial=16, K=3, Cout=8 (n_h=1).
    _run_case(2, 4, 16, 16, 3, 8, None, k1)
    # Spatially-tiled path without any wrapper pad (Ho=38 -> tile_h=19, n_h=2).
    _run_case(2, 4, 40, 40, 3, 8, None, k2)
    # N=1: heuristic splits Ho so both v7x TensorCores get a grid step (tile_h=7).
    _run_case(1, 4, 16, 16, 3, 8, None, k3)

    print("KERNEL_OK")
</pallas_src>

<mosaic_0001>
module attributes {stable_mosaic.version = 11 : i64} {
  func.func @_dsconv_kernel(%arg0: i32, %arg1: i32, %arg2: memref<1x4x16x16xf32, #tpu.memory_space<vmem>>, %arg3: memref<36xf32, #tpu.memory_space<smem>>, %arg4: memref<4x112xf32, #tpu.memory_space<vmem>>, %arg5: memref<1x1x14x112xf32, #tpu.memory_space<vmem>>) attributes {dimension_semantics = [#tpu.dimension_semantics<parallel>, #tpu.dimension_semantics<parallel>], iteration_bounds = array<i64: 2, 1>, scalar_prefetch = 0 : i64, scratch_operands = 0 : i64, tpu.core_type = #tpu.core_type<tc>, window_params = [{transform_indices = @transform_0, window_bounds = array<i64: 1, 4, 16, 16>}, {transform_indices = @transform_1, window_bounds = array<i64: 36>}, {pipeline_mode = #tpu.pipeline_mode<synchronous>, transform_indices = @transform_2, window_bounds = array<i64: 4, 112>}, {transform_indices = @transform_3, window_bounds = array<i64: 1, 1, 14, 112>}]} {
    %c14_i32 = arith.constant 14 : i32
    %0 = arith.muli %arg1, %c14_i32 : i32
    %cst = arith.constant 0.000000e+00 : f32
    %1 = vector.broadcast %cst : f32 to vector<14x112xf32>
    %cst_0 = arith.constant 0.000000e+00 : f32
    %2 = vector.broadcast %cst_0 : f32 to vector<14x14xf32>
    %c0_i32 = arith.constant 0 : i32
    %3 = arith.addi %0, %c0_i32 : i32
    %c0 = arith.constant 0 : index
    %c0_1 = arith.constant 0 : index
    %4 = arith.index_cast %3 : i32 to index
    %c0_2 = arith.constant 0 : index
    %5 = vector.load %arg2[%c0, %c0_1, %4, %c0_2] : memref<1x4x16x16xf32, #tpu.memory_space<vmem>>, vector<1x1x14x16xf32>
    %6 = vector.shape_cast %5 : vector<1x1x14x16xf32> to vector<14x16xf32>
    %7 = vector.extract_strided_slice %6 {offsets = [0, 0], sizes = [14, 14], strides = [1, 1]} : vector<14x16xf32> to vector<14x14xf32>
    %c0_3 = arith.constant 0 : index
    %8 = memref.load %arg3[%c0_3] : memref<36xf32, #tpu.memory_space<smem>>
    %9 = vector.broadcast %8 : f32 to vector<14x14xf32>
    %10 = arith.mulf %7, %9 : vector<14x14xf32>
    %11 = arith.addf %2, %10 : vector<14x14xf32>
    %12 = vector.extract_strided_slice %6 {offsets = [0, 1], sizes = [14, 14], strides = [1, 1]} : vector<14x16xf32> to vector<14x14xf32>
    %c1 = arith.constant 1 : index
    %13 = memref.load %arg3[%c1] : memref<36xf32, #tpu.memory_space<smem>>
    %14 = vector.broadcast %13 : f32 to vector<14x14xf32>
    %15 = arith.mulf %12, %14 : vector<14x14xf32>
    %16 = arith.addf %11, %15 : vector<14x14xf32>
    %17 = vector.extract_strided_slice %6 {offsets = [0, 2], sizes = [14, 14], strides = [1, 1]} : vector<14x16xf32> to vector<14x14xf32>
    %c2 = arith.constant 2 : index
    %18 = memref.load %arg3[%c2] : memref<36xf32, #tpu.memory_space<smem>>
    %19 = vector.broadcast %18 : f32 to vector<14x14xf32>
    %20 = arith.mulf %17, %19 : vector<14x14xf32>
    %21 = arith.addf %16, %20 : vector<14x14xf32>
    %c1_i32 = arith.constant 1 : i32
    %22 = arith.addi %0, %c1_i32 : i32
    %c0_4 = arith.constant 0 : index
    %c0_5 = arith.constant 0 : index
    %23 = arith.index_cast %22 : i32 to index
    %c0_6 = arith.constant 0 : index
    %24 = vector.load %arg2[%c0_4, %c0_5, %23, %c0_6] : memref<1x4x16x16xf32, #tpu.memory_space<vmem>>, vector<1x1x14x16xf32>
    %25 = vector.shape_cast %24 : vector<1x1x14x16xf32> to vector<14x16xf32>
    %26 = vector.extract_strided_slice %25 {offsets = [0, 0], sizes = [14, 14], strides = [1, 1]} : vector<14x16xf32> to vector<14x14xf32>
    %c3 = arith.constant 3 : index
    %27 = memref.load %arg3[%c3] : memref<36xf32, #tpu.memory_space<smem>>
    %28 = vector.broadcast %27 : f32 to vector<14x14xf32>
    %29 = arith.mulf %26, %28 : vector<14x14xf32>
    %30 = arith.addf %21, %29 : vector<14x14xf32>
    %31 = vector.extract_strided_slice %25 {offsets = [0, 1], sizes = [14, 14], strides = [1, 1]} : vector<14x16xf32> to vector<14x14xf32>
    %c4 = arith.constant 4 : index
    %32 = memref.load %arg3[%c4] : memref<36xf32, #tpu.memory_space<smem>>
    %33 = vector.broadcast %32 : f32 to vector<14x14xf32>
    %34 = arith.mulf %31, %33 : vector<14x14xf32>
    %35 = arith.addf %30, %34 : vector<14x14xf32>
    %36 = vector.extract_strided_slice %25 {offsets = [0, 2], sizes = [14, 14], strides = [1, 1]} : vector<14x16xf32> to vector<14x14xf32>
    %c5 = arith.constant 5 : index
    %37 = memref.load %arg3[%c5] : memref<36xf32, #tpu.memory_space<smem>>
    %38 = vector.broadcast %37 : f32 to vector<14x14xf32>
    %39 = arith.mulf %36, %38 : vector<14x14xf32>
    %40 = arith.addf %35, %39 : vector<14x14xf32>
    %c2_i32 = arith.constant 2 : i32
    %41 = arith.addi %0, %c2_i32 : i32
    %c0_7 = arith.constant 0 : index
    %c0_8 = arith.constant 0 : index
    %42 = arith.index_cast %41 : i32 to index
    %c0_9 = arith.constant 0 : index
    %43 = vector.load %arg2[%c0_7, %c0_8, %42, %c0_9] : memref<1x4x16x16xf32, #tpu.memory_space<vmem>>, vector<1x1x14x16xf32>
    %44 = vector.shape_cast %43 : vector<1x1x14x16xf32> to vector<14x16xf32>
    %45 = vector.extract_strided_slice %44 {offsets = [0, 0], sizes = [14, 14], strides = [1, 1]} : vector<14x16xf32> to vector<14x14xf32>
    %c6 = arith.constant 6 : index
    %46 = memref.load %arg3[%c6] : memref<36xf32, #tpu.memory_space<smem>>
    %47 = vector.broadcast %46 : f32 to vector<14x14xf32>
    %48 = arith.mulf %45, %47 : vector<14x14xf32>
    %49 = arith.addf %40, %48 : vector<14x14xf32>
    %50 = vector.extract_strided_slice %44 {offsets = [0, 1], sizes = [14, 14], strides = [1, 1]} : vector<14x16xf32> to vector<14x14xf32>
    %c7 = arith.constant 7 : index
    %51 = memref.load %arg3[%c7] : memref<36xf32, #tpu.memory_space<smem>>
    %52 = vector.broadcast %51 : f32 to vector<14x14xf32>
    %53 = arith.mulf %50, %52 : vector<14x14xf32>
    %54 = arith.addf %49, %53 : vector<14x14xf32>
    %55 = vector.extract_strided_slice %44 {offsets = [0, 2], sizes = [14, 14], strides = [1, 1]} : vector<14x16xf32> to vector<14x14xf32>
    %c8 = arith.constant 8 : index
    %56 = memref.load %arg3[%c8] : memref<36xf32, #tpu.memory_space<smem>>
    %57 = vector.broadcast %56 : f32 to vector<14x14xf32>
    %58 = arith.mulf %55, %57 : vector<14x14xf32>
    %59 = arith.addf %54, %58 : vector<14x14xf32>
    %60 = tpu.concatenate %59, %59, %59, %59, %59, %59, %59, %59 in 1 : vector<14x14xf32>, vector<14x14xf32>, vector<14x14xf32>, vector<14x14xf32>, vector<14x14xf32>, vector<14x14xf32>, vector<14x14xf32>, vector<14x14xf32> -> vector<14x112xf32>
    %c0_10 = arith.constant 0 : index
    %c0_11 = arith.constant 0 : index
    %61 = vector.load %arg4[%c0_10, %c0_11] : memref<4x112xf32, #tpu.memory_space<vmem>>, vector<1x112xf32>
    %62 = vector.broadcast %61 : vector<1x112xf32> to vector<14x112xf32>
    %63 = arith.mulf %60, %62 : vector<14x112xf32>
    %64 = arith.addf %1, %63 : vector<14x112xf32>
    %cst_12 = arith.constant 0.000000e+00 : f32
    %65 = vector.broadcast %cst_12 : f32 to vector<14x14xf32>
    %c0_i32_13 = arith.constant 0 : i32
    %66 = arith.addi %0, %c0_i32_13 : i32
    %c0_14 = arith.constant 0 : index
    %c1_15 = arith.constant 1 : index
    %67 = arith.index_cast %66 : i32 to index
    %c0_16 = arith.constant 0 : index
    %68 = vector.load %arg2[%c0_14, %c1_15, %67, %c0_16] : memref<1x4x16x16xf32, #tpu.memory_space<vmem>>, vector<1x1x14x16xf32>
    %69 = vector.shape_cast %68 : vector<1x1x14x16xf32> to vector<14x16xf32>
    %70 = vector.extract_strided_slice %69 {offsets = [0, 0], sizes = [14, 14], strides = [1, 1]} : vector<14x16xf32> to vector<14x14xf32>
    %c9 = arith.constant 9 : index
    %71 = memref.load %arg3[%c9] : memref<36xf32, #tpu.memory_space<smem>>
    %72 = vector.broadcast %71 : f32 to vector<14x14xf32>
    %73 = arith.mulf %70, %72 : vector<14x14xf32>
    %74 = arith.addf %65, %73 : vector<14x14xf32>
    %75 = vector.extract_strided_slice %69 {offsets = [0, 1], sizes = [14, 14], strides = [1, 1]} : vector<14x16xf32> to vector<14x14xf32>
    %c10 = arith.constant 10 : index
    %76 = memref.load %arg3[%c10] : memref<36xf32, #tpu.memory_space<smem>>
    %77 = vector.broadcast %76 : f32 to vector<14x14xf32>
    %78 = arith.mulf %75, %77 : vector<14x14xf32>
    %79 = arith.addf %74, %78 : vector<14x14xf32>
    %80 = vector.extract_strided_slice %69 {offsets = [0, 2], sizes = [14, 14], strides = [1, 1]} : vector<14x16xf32> to vector<14x14xf32>
    %c11 = arith.constant 11 : index
    %81 = memref.load %arg3[%c11] : memref<36xf32, #tpu.memory_space<smem>>
    %82 = vector.broadcast %81 : f32 to vector<14x14xf32>
    %83 = arith.mulf %80, %82 : vector<14x14xf32>
    %84 = arith.addf %79, %83 : vector<14x14xf32>
    %c1_i32_17 = arith.constant 1 : i32
    %85 = arith.addi %0, %c1_i32_17 : i32
    %c0_18 = arith.constant 0 : index
    %c1_19 = arith.constant 1 : index
    %86 = arith.index_cast %85 : i32 to index
    %c0_20 = arith.constant 0 : index
    %87 = vector.load %arg2[%c0_18, %c1_19, %86, %c0_20] : memref<1x4x16x16xf32, #tpu.memory_space<vmem>>, vector<1x1x14x16xf32>
    %88 = vector.shape_cast %87 : vector<1x1x14x16xf32> to vector<14x16xf32>
    %89 = vector.extract_strided_slice %88 {offsets = [0, 0], sizes = [14, 14], strides = [1, 1]} : vector<14x16xf32> to vector<14x14xf32>
    %c12 = arith.constant 12 : index
    %90 = memref.load %arg3[%c12] : memref<36xf32, #tpu.memory_space<smem>>
    %91 = vector.broadcast %90 : f32 to vector<14x14xf32>
    %92 = arith.mulf %89, %91 : vector<14x14xf32>
    %93 = arith.addf %84, %92 : vector<14x14xf32>
    %94 = vector.extract_strided_slice %88 {offsets = [0, 1], sizes = [14, 14], strides = [1, 1]} : vector<14x16xf32> to vector<14x14xf32>
    %c13 = arith.constant 13 : index
    %95 = memref.load %arg3[%c13] : memref<36xf32, #tpu.memory_space<smem>>
    %96 = vector.broadcast %95 : f32 to vector<14x14xf32>
    %97 = arith.mulf %94, %96 : vector<14x14xf32>
    %98 = arith.addf %93, %97 : vector<14x14xf32>
    %99 = vector.extract_strided_slice %88 {offsets = [0, 2], sizes = [14, 14], strides = [1, 1]} : vector<14x16xf32> to vector<14x14xf32>
    %c14 = arith.constant 14 : index
    %100 = memref.load %arg3[%c14] : memref<36xf32, #tpu.memory_space<smem>>
    %101 = vector.broadcast %100 : f32 to vector<14x14xf32>
    %102 = arith.mulf %99, %101 : vector<14x14xf32>
    %103 = arith.addf %98, %102 : vector<14x14xf32>
    %c2_i32_21 = arith.constant 2 : i32
    %104 = arith.addi %0, %c2_i32_21 : i32
    %c0_22 = arith.constant 0 : index
    %c1_23 = arith.constant 1 : index
    %105 = arith.index_cast %104 : i32 to index
    %c0_24 = arith.constant 0 : index
    %106 = vector.load %arg2[%c0_22, %c1_23, %105, %c0_24] : memref<1x4x16x16xf32, #tpu.memory_space<vmem>>, vector<1x1x14x16xf32>
    %107 = vector.shape_cast %106 : vector<1x1x14x16xf32> to vector<14x16xf32>
    %108 = vector.extract_strided_slice %107 {offsets = [0, 0], sizes = [14, 14], strides = [1, 1]} : vector<14x16xf32> to vector<14x14xf32>
    %c15 = arith.constant 15 : index
    %109 = memref.load %arg3[%c15] : memref<36xf32, #tpu.memory_space<smem>>
    %110 = vector.broadcast %109 : f32 to vector<14x14xf32>
    %111 = arith.mulf %108, %110 : vector<14x14xf32>
    %112 = arith.addf %103, %111 : vector<14x14xf32>
    %113 = vector.extract_strided_slice %107 {offsets = [0, 1], sizes = [14, 14], strides = [1, 1]} : vector<14x16xf32> to vector<14x14xf32>
    %c16 = arith.constant 16 : index
    %114 = memref.load %arg3[%c16] : memref<36xf32, #tpu.memory_space<smem>>
    %115 = vector.broadcast %114 : f32 to vector<14x14xf32>
    %116 = arith.mulf %113, %115 : vector<14x14xf32>
    %117 = arith.addf %112, %116 : vector<14x14xf32>
    %118 = vector.extract_strided_slice %107 {offsets = [0, 2], sizes = [14, 14], strides = [1, 1]} : vector<14x16xf32> to vector<14x14xf32>
    %c17 = arith.constant 17 : index
    %119 = memref.load %arg3[%c17] : memref<36xf32, #tpu.memory_space<smem>>
    %120 = vector.broadcast %119 : f32 to vector<14x14xf32>
    %121 = arith.mulf %118, %120 : vector<14x14xf32>
    %122 = arith.addf %117, %121 : vector<14x14xf32>
    %123 = tpu.concatenate %122, %122, %122, %122, %122, %122, %122, %122 in 1 : vector<14x14xf32>, vector<14x14xf32>, vector<14x14xf32>, vector<14x14xf32>, vector<14x14xf32>, vector<14x14xf32>, vector<14x14xf32>, vector<14x14xf32> -> vector<14x112xf32>
    %c1_25 = arith.constant 1 : index
    %c0_26 = arith.constant 0 : index
    %124 = vector.load %arg4[%c1_25, %c0_26] : memref<4x112xf32, #tpu.memory_space<vmem>>, vector<1x112xf32>
    %125 = vector.broadcast %124 : vector<1x112xf32> to vector<14x112xf32>
    %126 = arith.mulf %123, %125 : vector<14x112xf32>
    %127 = arith.addf %64, %126 : vector<14x112xf32>
    %cst_27 = arith.constant 0.000000e+00 : f32
    %128 = vector.broadcast %cst_27 : f32 to vector<14x14xf32>
    %c0_i32_28 = arith.constant 0 : i32
    %129 = arith.addi %0, %c0_i32_28 : i32
    %c0_29 = arith.constant 0 : index
    %c2_30 = arith.constant 2 : index
    %130 = arith.index_cast %129 : i32 to index
    %c0_31 = arith.constant 0 : index
    %131 = vector.load %arg2[%c0_29, %c2_30, %130, %c0_31] : memref<1x4x16x16xf32, #tpu.memory_space<vmem>>, vector<1x1x14x16xf32>
    %132 = vector.shape_cast %131 : vector<1x1x14x16xf32> to vector<14x16xf32>
    %133 = vector.extract_strided_slice %132 {offsets = [0, 0], sizes = [14, 14], strides = [1, 1]} : vector<14x16xf32> to vector<14x14xf32>
    %c18 = arith.constant 18 : index
    %134 = memref.load %arg3[%c18] : memref<36xf32, #tpu.memory_space<smem>>
    %135 = vector.broadcast %134 : f32 to vector<14x14xf32>
    %136 = arith.mulf %133, %135 : vector<14x14xf32>
    %137 = arith.addf %128, %136 : vector<14x14xf32>
    %138 = vector.extract_strided_slice %132 {offsets = [0, 1], sizes = [14, 14], strides = [1, 1]} : vector<14x16xf32> to vector<14x14xf32>
    %c19 = arith.constant 19 : index
    %139 = memref.load %arg3[%c19] : memref<36xf32, #tpu.memory_space<smem>>
    %140 = vector.broadcast %139 : f32 to vector<14x14xf32>
    %141 = arith.mulf %138, %140 : vector<14x14xf32>
    %142 = arith.addf %137, %141 : vector<14x14xf32>
    %143 = vector.extract_strided_slice %132 {offsets = [0, 2], sizes = [14, 14], strides = [1, 1]} : vector<14x16xf32> to vector<14x14xf32>
    %c20 = arith.constant 20 : index
    %144 = memref.load %arg3[%c20] : memref<36xf32, #tpu.memory_space<smem>>
    %145 = vector.broadcast %144 : f32 to vector<14x14xf32>
    %146 = arith.mulf %143, %145 : vector<14x14xf32>
    %147 = arith.addf %142, %146 : vector<14x14xf32>
    %c1_i32_32 = arith.constant 1 : i32
    %148 = arith.addi %0, %c1_i32_32 : i32
    %c0_33 = arith.constant 0 : index
    %c2_34 = arith.constant 2 : index
    %149 = arith.index_cast %148 : i32 to index
    %c0_35 = arith.constant 0 : index
    %150 = vector.load %arg2[%c0_33, %c2_34, %149, %c0_35] : memref<1x4x16x16xf32, #tpu.memory_space<vmem>>, vector<1x1x14x16xf32>
    %151 = vector.shape_cast %150 : vector<1x1x14x16xf32> to vector<14x16xf32>
    %152 = vector.extract_strided_slice %151 {offsets = [0, 0], sizes = [14, 14], strides = [1, 1]} : vector<14x16xf32> to vector<14x14xf32>
    %c21 = arith.constant 21 : index
    %153 = memref.load %arg3[%c21] : memref<36xf32, #tpu.memory_space<smem>>
    %154 = vector.broadcast %153 : f32 to vector<14x14xf32>
    %155 = arith.mulf %152, %154 : vector<14x14xf32>
    %156 = arith.addf %147, %155 : vector<14x14xf32>
    %157 = vector.extract_strided_slice %151 {offsets = [0, 1], sizes = [14, 14], strides = [1, 1]} : vector<14x16xf32> to vector<14x14xf32>
    %c22 = arith.constant 22 : index
    %158 = memref.load %arg3[%c22] : memref<36xf32, #tpu.memory_space<smem>>
    %159 = vector.broadcast %158 : f32 to vector<14x14xf32>
    %160 = arith.mulf %157, %159 : vector<14x14xf32>
    %161 = arith.addf %156, %160 : vector<14x14xf32>
    %162 = vector.extract_strided_slice %151 {offsets = [0, 2], sizes = [14, 14], strides = [1, 1]} : vector<14x16xf32> to vector<14x14xf32>
    %c23 = arith.constant 23 : index
    %163 = memref.load %arg3[%c23] : memref<36xf32, #tpu.memory_space<smem>>
    %164 = vector.broadcast %163 : f32 to vector<14x14xf32>
    %165 = arith.mulf %162, %164 : vector<14x14xf32>
    %166 = arith.addf %161, %165 : vector<14x14xf32>
    %c2_i32_36 = arith.constant 2 : i32
    %167 = arith.addi %0, %c2_i32_36 : i32
    %c0_37 = arith.constant 0 : index
    %c2_38 = arith.constant 2 : index
    %168 = arith.index_cast %167 : i32 to index
    %c0_39 = arith.constant 0 : index
    %169 = vector.load %arg2[%c0_37, %c2_38, %168, %c0_39] : memref<1x4x16x16xf32, #tpu.memory_space<vmem>>, vector<1x1x14x16xf32>
    %170 = vector.shape_cast %169 : vector<1x1x14x16xf32> to vector<14x16xf32>
    %171 = vector.extract_strided_slice %170 {offsets = [0, 0], sizes = [14, 14], strides = [1, 1]} : vector<14x16xf32> to vector<14x14xf32>
    %c24 = arith.constant 24 : index
    %172 = memref.load %arg3[%c24] : memref<36xf32, #tpu.memory_space<smem>>
    %173 = vector.broadcast %172 : f32 to vector<14x14xf32>
    %174 = arith.mulf %171, %173 : vector<14x14xf32>
    %175 = arith.addf %166, %174 : vector<14x14xf32>
    %176 = vector.extract_strided_slice %170 {offsets = [0, 1], sizes = [14, 14], strides = [1, 1]} : vector<14x16xf32> to vector<14x14xf32>
    %c25 = arith.constant 25 : index
    %177 = memref.load %arg3[%c25] : memref<36xf32, #tpu.memory_space<smem>>
    %178 = vector.broadcast %177 : f32 to vector<14x14xf32>
    %179 = arith.mulf %176, %178 : vector<14x14xf32>
    %180 = arith.addf %175, %179 : vector<14x14xf32>
    %181 = vector.extract_strided_slice %170 {offsets = [0, 2], sizes = [14, 14], strides = [1, 1]} : vector<14x16xf32> to vector<14x14xf32>
    %c26 = arith.constant 26 : index
    %182 = memref.load %arg3[%c26] : memref<36xf32, #tpu.memory_space<smem>>
    %183 = vector.broadcast %182 : f32 to vector<14x14xf32>
    %184 = arith.mulf %181, %183 : vector<14x14xf32>
    %185 = arith.addf %180, %184 : vector<14x14xf32>
    %186 = tpu.concatenate %185, %185, %185, %185, %185, %185, %185, %185 in 1 : vector<14x14xf32>, vector<14x14xf32>, vector<14x14xf32>, vector<14x14xf32>, vector<14x14xf32>, vector<14x14xf32>, vector<14x14xf32>, vector<14x14xf32> -> vector<14x112xf32>
    %c2_40 = arith.constant 2 : index
    %c0_41 = arith.constant 0 : index
    %187 = vector.load %arg4[%c2_40, %c0_41] : memref<4x112xf32, #tpu.memory_space<vmem>>, vector<1x112xf32>
    %188 = vector.broadcast %187 : vector<1x112xf32> to vector<14x112xf32>
    %189 = arith.mulf %186, %188 : vector<14x112xf32>
    %190 = arith.addf %127, %189 : vector<14x112xf32>
    %cst_42 = arith.constant 0.000000e+00 : f32
    %191 = vector.broadcast %cst_42 : f32 to vector<14x14xf32>
    %c0_i32_43 = arith.constant 0 : i32
    %192 = arith.addi %0, %c0_i32_43 : i32
    %c0_44 = arith.constant 0 : index
    %c3_45 = arith.constant 3 : index
    %193 = arith.index_cast %192 : i32 to index
    %c0_46 = arith.constant 0 : index
    %194 = vector.load %arg2[%c0_44, %c3_45, %193, %c0_46] : memref<1x4x16x16xf32, #tpu.memory_space<vmem>>, vector<1x1x14x16xf32>
    %195 = vector.shape_cast %194 : vector<1x1x14x16xf32> to vector<14x16xf32>
    %196 = vector.extract_strided_slice %195 {offsets = [0, 0], sizes = [14, 14], strides = [1, 1]} : vector<14x16xf32> to vector<14x14xf32>
    %c27 = arith.constant 27 : index
    %197 = memref.load %arg3[%c27] : memref<36xf32, #tpu.memory_space<smem>>
    %198 = vector.broadcast %197 : f32 to vector<14x14xf32>
    %199 = arith.mulf %196, %198 : vector<14x14xf32>
    %200 = arith.addf %191, %199 : vector<14x14xf32>
    %201 = vector.extract_strided_slice %195 {offsets = [0, 1], sizes = [14, 14], strides = [1, 1]} : vector<14x16xf32> to vector<14x14xf32>
    %c28 = arith.constant 28 : index
    %202 = memref.load %arg3[%c28] : memref<36xf32, #tpu.memory_space<smem>>
    %203 = vector.broadcast %202 : f32 to vector<14x14xf32>
    %204 = arith.mulf %201, %203 : vector<14x14xf32>
    %205 = arith.addf %200, %204 : vector<14x14xf32>
    %206 = vector.extract_strided_slice %195 {offsets = [0, 2], sizes = [14, 14], strides = [1, 1]} : vector<14x16xf32> to vector<14x14xf32>
    %c29 = arith.constant 29 : index
    %207 = memref.load %arg3[%c29] : memref<36xf32, #tpu.memory_space<smem>>
    %208 = vector.broadcast %207 : f32 to vector<14x14xf32>
    %209 = arith.mulf %206, %208 : vector<14x14xf32>
    %210 = arith.addf %205, %209 : vector<14x14xf32>
    %c1_i32_47 = arith.constant 1 : i32
    %211 = arith.addi %0, %c1_i32_47 : i32
    %c0_48 = arith.constant 0 : index
    %c3_49 = arith.constant 3 : index
    %212 = arith.index_cast %211 : i32 to index
    %c0_50 = arith.constant 0 : index
    %213 = vector.load %arg2[%c0_48, %c3_49, %212, %c0_50] : memref<1x4x16x16xf32, #tpu.memory_space<vmem>>, vector<1x1x14x16xf32>
    %214 = vector.shape_cast %213 : vector<1x1x14x16xf32> to vector<14x16xf32>
    %215 = vector.extract_strided_slice %214 {offsets = [0, 0], sizes = [14, 14], strides = [1, 1]} : vector<14x16xf32> to vector<14x14xf32>
    %c30 = arith.constant 30 : index
    %216 = memref.load %arg3[%c30] : memref<36xf32, #tpu.memory_space<smem>>
    %217 = vector.broadcast %216 : f32 to vector<14x14xf32>
    %218 = arith.mulf %215, %217 : vector<14x14xf32>
    %219 = arith.addf %210, %218 : vector<14x14xf32>
    %220 = vector.extract_strided_slice %214 {offsets = [0, 1], sizes = [14, 14], strides = [1, 1]} : vector<14x16xf32> to vector<14x14xf32>
    %c31 = arith.constant 31 : index
    %221 = memref.load %arg3[%c31] : memref<36xf32, #tpu.memory_space<smem>>
    %222 = vector.broadcast %221 : f32 to vector<14x14xf32>
    %223 = arith.mulf %220, %222 : vector<14x14xf32>
    %224 = arith.addf %219, %223 : vector<14x14xf32>
    %225 = vector.extract_strided_slice %214 {offsets = [0, 2], sizes = [14, 14], strides = [1, 1]} : vector<14x16xf32> to vector<14x14xf32>
    %c32 = arith.constant 32 : index
    %226 = memref.load %arg3[%c32] : memref<36xf32, #tpu.memory_space<smem>>
    %227 = vector.broadcast %226 : f32 to vector<14x14xf32>
    %228 = arith.mulf %225, %227 : vector<14x14xf32>
    %229 = arith.addf %224, %228 : vector<14x14xf32>
    %c2_i32_51 = arith.constant 2 : i32
    %230 = arith.addi %0, %c2_i32_51 : i32
    %c0_52 = arith.constant 0 : index
    %c3_53 = arith.constant 3 : index
    %231 = arith.index_cast %230 : i32 to index
    %c0_54 = arith.constant 0 : index
    %232 = vector.load %arg2[%c0_52, %c3_53, %231, %c0_54] : memref<1x4x16x16xf32, #tpu.memory_space<vmem>>, vector<1x1x14x16xf32>
    %233 = vector.shape_cast %232 : vector<1x1x14x16xf32> to vector<14x16xf32>
    %234 = vector.extract_strided_slice %233 {offsets = [0, 0], sizes = [14, 14], strides = [1, 1]} : vector<14x16xf32> to vector<14x14xf32>
    %c33 = arith.constant 33 : index
    %235 = memref.load %arg3[%c33] : memref<36xf32, #tpu.memory_space<smem>>
    %236 = vector.broadcast %235 : f32 to vector<14x14xf32>
    %237 = arith.mulf %234, %236 : vector<14x14xf32>
    %238 = arith.addf %229, %237 : vector<14x14xf32>
    %239 = vector.extract_strided_slice %233 {offsets = [0, 1], sizes = [14, 14], strides = [1, 1]} : vector<14x16xf32> to vector<14x14xf32>
    %c34 = arith.constant 34 : index
    %240 = memref.load %arg3[%c34] : memref<36xf32, #tpu.memory_space<smem>>
    %241 = vector.broadcast %240 : f32 to vector<14x14xf32>
    %242 = arith.mulf %239, %241 : vector<14x14xf32>
    %243 = arith.addf %238, %242 : vector<14x14xf32>
    %244 = vector.extract_strided_slice %233 {offsets = [0, 2], sizes = [14, 14], strides = [1, 1]} : vector<14x16xf32> to vector<14x14xf32>
    %c35 = arith.constant 35 : index
    %245 = memref.load %arg3[%c35] : memref<36xf32, #tpu.memory_space<smem>>
    %246 = vector.broadcast %245 : f32 to vector<14x14xf32>
    %247 = arith.mulf %244, %246 : vector<14x14xf32>
    %248 = arith.addf %243, %247 : vector<14x14xf32>
    %249 = tpu.concatenate %248, %248, %248, %248, %248, %248, %248, %248 in 1 : vector<14x14xf32>, vector<14x14xf32>, vector<14x14xf32>, vector<14x14xf32>, vector<14x14xf32>, vector<14x14xf32>, vector<14x14xf32>, vector<14x14xf32> -> vector<14x112xf32>
    %c3_55 = arith.constant 3 : index
    %c0_56 = arith.constant 0 : index
    %250 = vector.load %arg4[%c3_55, %c0_56] : memref<4x112xf32, #tpu.memory_space<vmem>>, vector<1x112xf32>
    %251 = vector.broadcast %250 : vector<1x112xf32> to vector<14x112xf32>
    %252 = arith.mulf %249, %251 : vector<14x112xf32>
    %253 = arith.addf %190, %252 : vector<14x112xf32>
    %c0_57 = arith.constant 0 : index
    %c0_58 = arith.constant 0 : index
    %c0_59 = arith.constant 0 : index
    %c0_60 = arith.constant 0 : index
    %254 = vector.load %arg5[%c0_57, %c0_58, %c0_59, %c0_60] : memref<1x1x14x112xf32, #tpu.memory_space<vmem>>, vector<1x1x14x112xf32>
    %255 = vector.shape_cast %254 : vector<1x1x14x112xf32> to vector<14x112xf32>
    %256 = vector.shape_cast %253 : vector<14x112xf32> to vector<1x1x14x112xf32>
    tpu.vector_store %arg5[%c0_57, %c0_58, %c0_59, %c0_60], %256 {strides = array<i32>} : memref<1x1x14x112xf32, #tpu.memory_space<vmem>>, vector<1x1x14x112xf32>,
    return
  }
  func.func @transform_0(%arg0: i32, %arg1: i32) -> (i32, i32, i32, i32) {
    %c0_i32 = arith.constant 0 : i32
    %c0_i32_0 = arith.constant 0 : i32
    %c0_i32_1 = arith.constant 0 : i32
    %c0_i32_2 = arith.constant 0 : i32
    return %arg0, %c0_i32, %c0_i32_0, %c0_i32_1 : i32, i32, i32, i32
  }
  func.func @transform_1(%arg0: i32, %arg1: i32) -> i32 {
    %c0_i32 = arith.constant 0 : i32
    %c0_i32_0 = arith.constant 0 : i32
    return %c0_i32 : i32
  }
  func.func @transform_2(%arg0: i32, %arg1: i32) -> (i32, i32) {
    %c0_i32 = arith.constant 0 : i32
    %c0_i32_0 = arith.constant 0 : i32
    %c0_i32_1 = arith.constant 0 : i32
    return %c0_i32, %c0_i32_0 : i32, i32
  }
  func.func @transform_3(%arg0: i32, %arg1: i32) -> (i32, i32, i32, i32) {
    %c0_i32 = arith.constant 0 : i32
    %c0_i32_0 = arith.constant 0 : i32
    %c0_i32_1 = arith.constant 0 : i32
    return %arg0, %arg1, %c0_i32, %c0_i32_0 : i32, i32, i32, i32
  }
}

</mosaic_0001>

<bundles_post_ra>
// kernel: tpu_custom_call.1
= control target key start
LH: loop header
LB: loop body
LE: loop exit
PB: predicated region body
PF: predicated region fallthrough
CT: control target
= control target key end

     0   :  { %8 = vsyncpa [#allocation3], 0  ;;  %s1951_s0 = inlined_call_operand.hbm [shape: f32[2,4,16,16], index: 0, kind: input, shape index: {}]   ;;  %s1952_s1 = inlined_call_operand.vmem [shape: f32[36], index: 1, kind: input, shape index: {}]   ;;  %s1953_s2 = inlined_call_operand.vmem [shape: f32[4,112], index: 2, kind: input, shape index: {}]   ;;  %s1954_s3 = inlined_call_operand.vmem [shape: f32[2,1,14,112], index: 3, kind: output, shape index: {}]  }
   0x1   :  { %10 = vsyncpa [#allocation3 + $0x1], 0 }
   0x2   :  { %11 = vsyncpa [#allocation4], 0  ;;  %s1393_s12 = smov 0   ;;  %s1395_s13 = smov 0  }
   0x3   :  { %s1397_s14 = smov 0   ;;  %s1399_s15 = smov 0  }
   0x4   :  { %s1401_s16 = smov 0   ;;  %s1403_s17 = smov 0  }
   0x5 LB: > { %s1104_s18 = sadd.s32 4294967295, %s1358_s17   ;;  %s36_s19 = sadd.s32 1, %s1346_s14  ;;  %s1358_s17 = sphi %s1403_s17, %s17_s17   ;;  %s1354_s16 = sphi %s1401_s16, %s1971_s16   ;;  %s1350_s15 = sphi %s1399_s15, %s1970_s15   ;;  %s1346_s14 = sphi %s1397_s14, %s1969_s14   ;;  %s1342_s13 = sphi %s1395_s13, %s1968_s13   ;;  %s1338_s12 = sphi %s1393_s12, %s1967_s12  }
   0x6   : > { %p43_p0 = scmp.ne.s32.totalorder %s1346_s14, %s1342_s13  ;;  %p44_p1 = scmp.eq.s32.totalorder %s1358_s17, 0 }
   0x7   : > { %p49_p2 = scmp.ne.s32.totalorder %s1342_s13, %s1338_s12  ;;  %p1427_p3 = scmp.eq.s32.totalorder %s1104_s18, 0 }
   0x8   : > { %p45_p4 = por %p44_p1, %p43_p0  ;;  %p1106_p5 = scmp.ge.s32.totalorder %s1358_s17, 1 }
   0x9   : > { %s1959_s20 = scalar_select %p1427_p3, 1, 0 }
   0xa   : > { %p1434_p6 = por %p1427_p3, %p49_p2  ;;  %p130_p7 = scmp.lt.s32.totalorder %s1358_s17, 3 }
   0xb   : > { %s143_s24 = sshll.u32 %s1952_s1, 4  ;;  %p1197_p10 = scmp.lt.s32.totalorder %s1358_s17, 2  ;;  %s144_s24 = int_to_ptr.vmem [resolvable:$true] %s143_s24 }
   0xc   : > { %s1960_s21 = scalar_select %p1434_p6, 1, 0 }
   0xd   : > { %p1442_p8 = pnand %p1106_p5, %p130_p7  ;;  %s157_s26 = sand.u32 1, %s1346_s14  }
   0xe   : > { %p1452_p12 = pnand %p1197_p10, %p45_p4  ;;  %s1259_s28 = scalar_lea.vmem %s144_s24, 16 }
   0xf   : > { %s1961_s25 = scalar_select %p1442_p8, 1, 0 }
  0x10   : > { %p1188_p9 = pneg %p1442_p8  ;;  %p1260_p13 = scmp.ne.s32.totalorder %s144_s24, %s1259_s28 }
  0x11   : > { %p1267_p5 = scmp.lt.s32.totalorder %s144_s24, %s144_s24  ;;  %p1268_p7 = scmp.lt.s32.totalorder %s1259_s28, %s1259_s28 }
  0x12   : > { %p1189_p11 = pnand %p1188_p9, %p1427_p3 }
  0x13   : > { %p1269_p6 = por %p1268_p7, %p1267_p5 }
  0x14   : > { %p1261_p0 = pneg %p1189_p11 }
  0x16   : > { %p1262_p1 = pnand %p1261_p0, %p1260_p13 }
  0x18   : > { %p1263_p2 = pneg %p1262_p1 }
  0x1a   : > { %p1270_p8 = pnand %p1269_p6, %p1263_p2 }
  0x1c   : > { %1273 = shalt.err (!%p1270_p8)
}
  0x1d   : > { %s1360_s29 = smov [#allocation5]   ;;  %s29_s30 = sadd.s32 1, %s1354_s16 }
  0x1e   : > { %1191 = dma.vmem_to_smem (!%p1189_p11), %s144_s24, 16, %s1360_s29, [#allocation4]  }
  0x1f   : > { %s1109_s4 = sshll.u32 %s157_s26, 6  ;;  %p31_p4 = scmp.ge.s32.totalorder %s29_s30, 2 }
  0x20   : > { %s1180_s5 = sshll.u32 %s1354_s16, 10  ;;  %s161_s6 = scalar_lea.vmem [#allocation2], %s1109_s4 }
  0x21   : > { %s168_s7 = sshll.u32 %s161_s6, 4  ;;  %s1973_s30 = smov (%p31_p4, %s29_s30), 0  ;;  %s1465_s7 = int_to_ptr.vmem [resolvable:$true] %s168_s7 }
  0x22   : > { %s1463_s10 = scalar_lea.hbm %s1951_s0, %s1180_s5  ;;  %s33_s11 = ssub.s32 %s1354_s16, %s1973_s30 }
  0x23   : > { %p1469_p6 = scmp.eq.s32.totalorder %s33_s11, 0  ;;  %s1473_s18 = scalar_lea.sflag [#allocation3], %s157_s26 }
  0x24   : > { %s1274_s22 = scalar_lea.hbm %s1463_s10, 1024  ;;  %p1276_p9 = pneg %p1452_p12 }
  0x25   : > { %p1275_p8 = scmp.ne.s32.totalorder %s1463_s10, %s1274_s22  ;;  %s1279_s28 = scalar_lea.hbm %s1951_s0, 2048 }
  0x26   : > { %p1280_p13 = scmp.lt.u32.totalorder %s1463_s10, %s1951_s0  ;;  %p1281_p0 = scmp.lt.u32.totalorder %s1279_s28, %s1274_s22 }
  0x27   : > { %p1277_p10 = pnand %p1276_p9, %p1275_p8  ;;  %p1283_p2 = scmp.lt.u32.totalorder %s1274_s22, %s1463_s10 }
  0x28   : > { %p1282_p1 = por %p1281_p0, %p1280_p13 }
  0x29   : > { %p1278_p11 = pneg %p1277_p10 }
  0x2a   : > { %p1284_p5 = por %p1283_p2, %p1282_p1 }
  0x2c   : > { %p1285_p7 = pnand %p1284_p5, %p1278_p11 }
  0x2e   : > { %1288 = shalt.err (!%p1285_p7)
}
  0x2f   : > { %s1289_s26 = scalar_lea.vmem %s1465_s7, 1024  ;;  %s1361_s5 = smov [#allocation2]  }
  0x30   : > { %p1290_p4 = scmp.ne.s32.totalorder %s1465_s7, %s1289_s26  ;;  %s1294_s6 = sshll.u32 %s1361_s5, 4  ;;  %s1295_s6 = int_to_ptr.vmem [resolvable:$false] %s1294_s6 }
  0x31   : > { %s1296_s8 = scalar_lea.vmem %s1295_s6, 2048  ;;  %p1297_p3 = scmp.lt.s32.totalorder %s1465_s7, %s1295_s6 }
  0x32   : > { %p1292_p8 = pnand %p1290_p4, %p1276_p9  ;;  %p1298_p13 = scmp.lt.s32.totalorder %s1296_s8, %s1289_s26 }
  0x34   : > { %p1293_p10 = pneg %p1292_p8  ;;  %p1299_p0 = por %p1298_p13, %p1297_p3 }
  0x36   : > { %p1300_p1 = pnand %p1299_p0, %p1293_p10 }
  0x38   : > { %1303 = shalt.err (!%p1300_p1)
}
  0x39   : > { %s1362_s9 = smov 128   ;;  %s1363_s11 = smov 8  }
  0x3a   : > { %1195 = dma.hbm_to_vmem [thread:$0]  (!%p1452_p12), %s1463_s10, 1024, %s1465_s7, %s1473_s18, %s1362_s9, %s1362_s9, %s1363_s11  }
  0x3b   : > { %s1506_s22 = scalar_select %p1469_p6, %s1346_s14, %s36_s19  }
  0x3c   : > { %p1964_p9 = scmp.ne.s32.totalorder %s1961_s25, 0 }
  0x3d   : > { %s182_s23 = sand.u32 (!%p1964_p9), 1, %s1342_s13   ;;  %p1965_p3 = scmp.ne.s32.totalorder (!%p1964_p9), %s1960_s21, 0 }
  0x3e   : > { %180 = sbr.rel (%p1964_p9) target bundleno = 479 (0x1df), region = 32  ;;  %s1113_s24 = sshll.u32 (!%p1964_p9), %s182_s23, 6 }
  0x3f   : > { %s183_s28 = scalar_lea.sflag (!%p1964_p9), [#allocation3], %s182_s23  ;;  %s1511_s29 = scalar_lea.vmem (!%p1964_p9), [#allocation2], %s1113_s24 }
  0x45   : > { %1329 = dma.done.wait (%p1965_p3), %s183_s28, 1024  }
  0x46   : > { %1331 = vsyncadd (%p1965_p3), %s183_s28, 4294966272  ;;  %p1966_p12 = scmp.ne.s32.totalorder %s1959_s20, 0 }
  0x48   : > { %1333 = dma.done.wait (%p1966_p12), [#allocation4], 16  }
  0x49   : > { %1335 = vsyncadd (%p1966_p12), [#allocation4], 4294967280 }
  0x4a   : > { %195 = sfence }
  0x4b   : > { %s1118_s19 = sld [smem:[#allocation5 + $0x2]]  ;;  %s1117_s25 = sld [smem:[#allocation5 + $0x1]]  ;;  %v1522_v0 = vld [vmem:[%s1511_s29] sm:$0xff]  ;;  %v1525_v1 = vld [vmem:[%s1511_s29 + $0x8] sm:$0x3f]  ;;  %v1565_v26 = vld [vmem:[%s1511_s29 + $0x10] sm:$0xff] }
  0x4c   : > { %s1122_s27 = sld [smem:[#allocation5 + $0x4]]  ;;  %s1123_s21 = sld [smem:[#allocation5 + $0x5]]  ;;  %v1534_v8 = vld [vmem:[%s1511_s29 + $0x9] sm:$0x3f]  ;;  %v1537_v10 = vld [vmem:[%s1511_s29 + $0x1] sm:$0xff]  ;;  %v1579_v34 = vld [vmem:[%s1511_s29 + $0x11] sm:$0xff] }
  0x4d   : > { %s1364_s20 = smov 126   ;;  %s1365_s7 = smov 127   ;;  %v1548_v16 = vld [vmem:[%s1511_s29 + $0xa] sm:$0x3f]  ;;  %v1551_v18 = vld [vmem:[%s1511_s29 + $0x2] sm:$0xff]  ;;  %v1603_v47 = vld [vmem:[%s1511_s29 + $0x30] sm:$0xff] }
  0x4e   : > { %s1127_s10 = sld [smem:[#allocation5 + $0x7]]  ;;  %s1128_s12 = sld [smem:[#allocation5 + $0x8]]  ;;  %v1562_v24 = vld [vmem:[%s1511_s29 + $0x18] sm:$0x3f]  ;;  %v1586_v37 = vld [vmem:[%s1511_s29 + $0x28] sm:$0x3f] }
  0x4f   : > { %s1133_s18 = sld [smem:[#allocation5 + $0xa]]  ;;  %s1134_s4 = sld [smem:[#allocation5 + $0xb]]  ;;  %v1576_v32 = vld [vmem:[%s1511_s29 + $0x19] sm:$0x3f]  ;;  %v1589_v39 = vld [vmem:[%s1511_s29 + $0x20] sm:$0xff]  ;;  %vm385_vm0 = vcmask 113664  }
  0x50   : > { %s1138_s26 = sld [smem:[#allocation5 + $0xd]]  ;;  %s1149_s5 = sld [smem:[#allocation5 + $0x13]]  ;;  %v1600_v45 = vld [vmem:[%s1511_s29 + $0x38] sm:$0x3f]  ;;  %v1618_v56 = vld [vmem:[%s1511_s29 + $0x29] sm:$0x3f] }
  0x51   : > { %v252_v2 = vstv %s1118_s19  ;;  %v238_v4 = vstv %s1117_s25  ;;  %s1150_s6 = sld [smem:[#allocation5 + $0x14]]  ;;  %s1166_s9 = sld [smem:[#allocation5 + $0x1d]]  ;;  %v1621_v58 = vld [vmem:[%s1511_s29 + $0x21] sm:$0xff]  ;;  %vm388_vm1 = vcmask 228352   ;;  %vm391_vm2 = vcmask 343040  }
  0x52   : > { %v253_v3 = vmul.f32 %v252_v2, %v1522_v0  ;;  %v239_v5 = vmul.f32 %v238_v4, %v1522_v0  ;;  %v254_v6 = vmul.f32 %v252_v2, %v1525_v1  ;;  %v240_v7 = vmul.f32 %v238_v4, %v1525_v1  ;;  %s1165_s8 = sld [smem:[#allocation5 + $0x1c]]  ;;  %s1139_s11 = sld [smem:[#allocation5 + $0xe]]  ;;  %v1632_v2 = vld [vmem:[%s1511_s29 + $0x39] sm:$0x3f]  ;;  %v1635_v4 = vld [vmem:[%s1511_s29 + $0x31] sm:$0xff] }
  0x53   : > { %v276_v9 = vstv %s1122_s27  ;;  %v290_v13 = vstv %s1123_s21  ;;  %s1154_s23 = sld [smem:[#allocation5 + $0x16]]  ;;  %s1155_s24 = sld [smem:[#allocation5 + $0x17]]  ;;  %vm394_vm3 = vcmask 457728   ;;  %vm397_vm4 = vcmask 572416  }
  0x54   : > { %257 = vrot.lane.b32.xlu1 %v253_v3, %s1364_s20  ;;  %243 = vrot.lane.b32.xlu0 %v239_v5, %s1365_s7  ;;  %v278_v11 = vmul.f32 %v1534_v8, %v276_v9  ;;  %v277_v12 = vmul.f32 %v1537_v10, %v276_v9  ;;  %v292_v14 = vmul.f32 %v1534_v8, %v290_v13  ;;  %v314_v17 = vstv %s1127_s10  ;;  %s1170_s28 = sld [smem:[#allocation5 + $0x1f]]  ;;  %s1143_s19 = sld [smem:[#allocation5 + $0x10]] }
  0x55   : > { %v291_v15 = vmul.f32 %v1537_v10, %v290_v13  ;;  %v316_v19 = vmul.f32 %v1548_v16, %v314_v17  ;;  %v315_v20 = vmul.f32 %v1551_v18, %v314_v17  ;;  %v328_v21 = vstv %s1128_s12  ;;  %s1171_s25 = sld [smem:[#allocation5 + $0x20]]  ;;  %s1144_s27 = sld [smem:[#allocation5 + $0x11]] }
  0x56   : > { %v330_v22 = vmul.f32 %v1548_v16, %v328_v21  ;;  %v329_v23 = vmul.f32 %v1551_v18, %v328_v21  ;;  %v426_v25 = vstv %s1133_s18  ;;  %v440_v29 = vstv %s1134_s4  ;;  %s1159_s21 = sld [smem:[#allocation5 + $0x19]]  ;;  %s1160_s10 = sld [smem:[#allocation5 + $0x1a]] }
  0x57   : > { %v428_v27 = vmul.f32 %v1562_v24, %v426_v25  ;;  %v427_v28 = vmul.f32 %v1565_v26, %v426_v25  ;;  %v442_v30 = vmul.f32 %v1562_v24, %v440_v29  ;;  %v441_v31 = vmul.f32 %v1565_v26, %v440_v29  ;;  %s1175_s12 = sld [smem:[#allocation5 + $0x22]]  ;;  %v1663_v25 = vld [vmem:[%s1511_s29 + $0x22] sm:$0xff]  ;;  %s1176_s18 = sld [smem:[#allocation5 + $0x23]] }
  0x58   : > { %259 = vrot.lane.b32.xlu1 %v254_v6, %s1364_s20  ;;  %245 = vrot.lane.b32.xlu0 %v240_v7, %s1365_s7  ;;  %v464_v33 = vstv %s1138_s26  ;;  %v607_v38 = vstv %s1149_s5  ;;  %s1121_s4 = sld [smem:[#allocation5 + $0x3]]  ;;  %s1126_s26 = sld [smem:[#allocation5 + $0x6]]  ;;  %vm400_vm5 = vcmask 687104   ;;  %vm403_vm6 = vcmask 801792  }
  0x59   : > { %v466_v35 = vmul.f32 %v1576_v32, %v464_v33  ;;  %v465_v36 = vmul.f32 %v1579_v34, %v464_v33  ;;  %v609_v40 = vmul.f32 %v1586_v37, %v607_v38  ;;  %v608_v41 = vmul.f32 %v1589_v39, %v607_v38  ;;  %v1642_v7 = vld [vmem:[%s1511_s29 + $0x1a] sm:$0x3f]  ;;  %s1366_s5 = smov 14   ;;  %p218_p6 = scmp.lt.s32.totalorder %s1350_s15, 1 }
  0x5a   : > { %v621_v42 = vstv %s1150_s6  ;;  %v788_v46 = vstv %s1165_s8  ;;  %v802_v50 = vstv %s1166_s9  ;;  %v478_v53 = vstv %s1139_s11  ;;  %s1148_s6 = sld [smem:[#allocation5 + $0x12]]  ;;  %s1367_s8 = smov 28  }
  0x5b   : > { %v623_v43 = vmul.f32 %v1586_v37, %v621_v42  ;;  %v622_v44 = vmul.f32 %v1589_v39, %v621_v42  ;;  %v790_v48 = vmul.f32 %v1600_v45, %v788_v46  ;;  %v789_v49 = vmul.f32 %v1603_v47, %v788_v46  ;;  %v1674_v33 = vld [vmem:[%s1511_s29 + $0x3a] sm:$0x3f]  ;;  %s1711_s9 = sld [smem:[#allocation5 + $0x15]]  ;;  %s1368_s11 = smov 42  }
  0x5c   : > { %283 = vrot.lane.b32.xlu1 %v278_v11, %s1365_s7  ;;  %281 = vrot.lane.b32.xlu0 %v277_v12, %s1365_s7  ;;  %v804_v51 = vmul.f32 %v1600_v45, %v802_v50  ;;  %v803_v52 = vmul.f32 %v1603_v47, %v802_v50  ;;  %v480_v54 = vmul.f32 %v1576_v32, %v478_v53  ;;  %v645_v57 = vstv %s1154_s23  ;;  %v1645_v11 = vld [vmem:[%s1511_s29 + $0x12] sm:$0xff]  ;;  %s1164_s23 = sld [smem:[#allocation5 + $0x1b]]  ;;  %s1975_s15 = smov (!%p218_p6, %s1350_s15), 1 }
  0x5d   : > { %v479_v55 = vmul.f32 %v1579_v34, %v478_v53  ;;  %v647_v59 = vmul.f32 %v1618_v56, %v645_v57  ;;  %v646_v60 = vmul.f32 %v1621_v58, %v645_v57  ;;  %v659_v61 = vstv %s1155_s24  ;;  %s1369_s24 = smov 56  }
  0x5e   : > { %v661_v62 = vmul.f32 %v1618_v56, %v659_v61  ;;  %v660_v63 = vmul.f32 %v1621_v58, %v659_v61  ;;  %v826_v3 = vstv %s1170_s28  ;;  %v502_v9 = vstv %s1143_s19  ;;  %s1724_s28 = sld [smem:[#allocation5 + $0x1e]]  ;;  %s1370_s19 = smov 70  }
  0x5f   : > { %v828_v5 = vmul.f32 %v1632_v2, %v826_v3  ;;  %v827_v6 = vmul.f32 %v1635_v4, %v826_v3  ;;  %v504_v12 = vmul.f32 %v1642_v7, %v502_v9  ;;  %v503_v13 = vmul.f32 %v1645_v11, %v502_v9 }
  0x60   : > { %297 = vrot.lane.b32.xlu1 %v292_v14, %s1364_s20  ;;  %295 = vrot.lane.b32.xlu0 %v291_v15, %s1364_s20  ;;  %v840_v14 = vstv %s1171_s25  ;;  %v697_v29 = vstv %s1160_s10  ;;  %s1732_s25 = sld [smem:[#allocation5 + $0xf]]  ;;  %s1158_s10 = sld [smem:[#allocation5 + $0x18]]  ;;  %vm960_vm7 = vcmask 914432   ;;  %vm958_vm8 = vcmask 916480  }
  0x61   : > { %v842_v15 = vmul.f32 %v1632_v2, %v840_v14  ;;  %v841_v17 = vmul.f32 %v1635_v4, %v840_v14 }
  0x64   : > { %321 = vrot.lane.b32.xlu1 %v316_v19, %s1365_s7  ;;  %319 = vrot.lane.b32.xlu0 %v315_v20, %s1365_s7  ;;  %v516_v19 = vstv %s1144_s27  ;;  %s1371_s27 = smov 84  }
  0x65   : > { %v518_v20 = vmul.f32 %v1642_v7, %v516_v19  ;;  %v517_v21 = vmul.f32 %v1645_v11, %v516_v19 }
  0x68   : > { %335 = vrot.lane.b32.xlu1 %v330_v22, %s1364_s20  ;;  %333 = vrot.lane.b32.xlu0 %v329_v23, %s1364_s20  ;;  %v1660_v22 = vld [vmem:[%s1511_s29 + $0x2a] sm:$0x3f]  ;;  %v683_v23 = vstv %s1159_s21  ;;  %s1372_s21 = smov 98  }
  0x6c   : > { %433 = vrot.lane.b32.xlu1 %v428_v27, %s1365_s7  ;;  %431 = vrot.lane.b32.xlu0 %v427_v28, %s1365_s7  ;;  %v685_v27 = vmul.f32 %v1660_v22, %v683_v23  ;;  %v684_v28 = vmul.f32 %v1663_v25, %v683_v23 }
  0x70   : > { %447 = vrot.lane.b32.xlu1 %v442_v30, %s1364_s20  ;;  %445 = vrot.lane.b32.xlu0 %v441_v31, %s1364_s20  ;;  %v699_v30 = vmul.f32 %v1660_v22, %v697_v29  ;;  %v698_v31 = vmul.f32 %v1663_v25, %v697_v29 }
  0x74   : > { %471 = vrot.lane.b32.xlu1 %v466_v35, %s1365_s7  ;;  %469 = vrot.lane.b32.xlu0 %v465_v36, %s1365_s7  ;;  %v864_v35 = vstv %s1175_s12  ;;  %v1677_v36 = vld [vmem:[%s1511_s29 + $0x32] sm:$0xff]  ;;  %s231_s29 = sld [smem:[#allocation5]]  ;;  %s1174_s12 = sld [smem:[#allocation5 + $0x21]] }
  0x75   : > { %v866_v38 = vmul.f32 %v1674_v33, %v864_v35 }
  0x78   : > { %614 = vrot.lane.b32.xlu1 %v609_v40, %s1365_s7  ;;  %612 = vrot.lane.b32.xlu0 %v608_v41, %s1365_s7  ;;  %v865_v40 = vmul.f32 %v1677_v36, %v864_v35  ;;  %v878_v41 = vstv %s1176_s18 }
  0x79   : > { %v880_v42 = vmul.f32 %v1674_v33, %v878_v41 }
  0x7c   : > { %628 = vrot.lane.b32.xlu1 %v623_v43, %s1364_s20  ;;  %626 = vrot.lane.b32.xlu0 %v622_v44, %s1364_s20  ;;  %v879_v43 = vmul.f32 %v1677_v36, %v878_v41  ;;  %v232_v44 = vstv %s231_s29 }
  0x7d   : > { %v233_v46 = vmul.f32 %v232_v44, %v1522_v0  ;;  %v308_v0 = vstv %s1126_s26 }
  0x80   : > { %795 = vrot.lane.b32.xlu1 %v790_v48, %s1365_s7  ;;  %793 = vrot.lane.b32.xlu0 %v789_v49, %s1365_s7  ;;  %v270_v48 = vstv %s1121_s4 }
  0x81   : > { %v271_v53 = vmul.f32 %v1537_v10, %v270_v48 }
  0x84   : > { %809 = vrot.lane.b32.xlu1 %v804_v51, %s1364_s20  ;;  %807 = vrot.lane.b32.xlu0 %v803_v52, %s1364_s20  ;;  %v234_v52 = vmul.f32 %v232_v44, %v1525_v1  ;;  %v309_v1 = vmul.f32 %v1551_v18, %v308_v0 }
  0x88   : > { %485 = vrot.lane.b32.xlu1 %v480_v54, %s1364_s20  ;;  %483 = vrot.lane.b32.xlu0 %v479_v55, %s1364_s20 }
  0x8c   : > { %652 = vrot.lane.b32.xlu1 %v647_v59, %s1365_s7  ;;  %650 = vrot.lane.b32.xlu0 %v646_v60, %s1365_s7  ;;  %v272_v60 = vmul.f32 %v1534_v8, %v270_v48 }
  0x90   : > { %666 = vrot.lane.b32.xlu1 %v661_v62, %s1364_s20  ;;  %664 = vrot.lane.b32.xlu0 %v660_v63, %s1364_s20 }
  0x94   : > { %833 = vrot.lane.b32.xlu1 %v828_v5, %s1365_s7  ;;  %831 = vrot.lane.b32.xlu0 %v827_v6, %s1365_s7 }
  0x98   : > { %509 = vrot.lane.b32.xlu1 %v504_v12, %s1365_s7  ;;  %507 = vrot.lane.b32.xlu0 %v503_v13, %s1365_s7  ;;  %v310_v13 = vmul.f32 %v1548_v16, %v308_v0 }
  0x9c   : > { %847 = vrot.lane.b32.xlu1 %v842_v15, %s1364_s20  ;;  %845 = vrot.lane.b32.xlu0 %v841_v17, %s1364_s20 }
  0xa0   : > { %523 = vrot.lane.b32.xlu1 %v518_v20, %s1364_s20  ;;  %521 = vrot.lane.b32.xlu0 %v517_v21, %s1364_s20 }
  0xa4   : > { %690 = vrot.lane.b32.xlu1 %v685_v27, %s1365_s7  ;;  %688 = vrot.lane.b32.xlu0 %v684_v28, %s1365_s7 }
  0xa8   : > { %704 = vrot.lane.b32.xlu1 %v699_v30, %s1364_s20  ;;  %702 = vrot.lane.b32.xlu0 %v698_v31, %s1364_s20 }
  0xac   : > { %871 = vrot.lane.b32.xlu1 %v866_v38, %s1365_s7  ;;  %869 = vrot.lane.b32.xlu0 %v865_v40, %s1365_s7  ;;  %s1137_s7 = sld [smem:[#allocation5 + $0xc]] }
  0xb0   : > { %885 = vrot.lane.b32.xlu1 %v880_v42, %s1364_s20  ;;  %883 = vrot.lane.b32.xlu0 %v879_v43, %s1364_s20  ;;  %s1132_s20 = sld [smem:[#allocation5 + $0x9]] }
  0xb2   : > { %v458_v38 = vstv %s1137_s7 }
  0xb3   : > { %v460_v42 = vmul.f32 %v1576_v32, %v458_v38  ;;  %v459_v44 = vmul.f32 %v1579_v34, %v458_v38 }
  0xb6   : > { %v420_v28 = vstv %s1132_s20 }
  0xb7   : > { %v422_v16 = vmul.f32 %v1562_v24, %v420_v28  ;;  %v421_v35 = vmul.f32 %v1565_v26, %v420_v28 }
  0xc6   : > { %v258_v49 = vpop.permute.xlu1 %257  ;;  %v244_v50 = vpop.permute.xlu0 %243 }
  0xc7   : > { %v249_v51 = vadd.f32 %v244_v50, %v233_v46 }
  0xc9   : > { %v263_v54 = vadd.f32 %v258_v49, %v249_v51  ;;  %v601_v51 = vstv %s1148_s6 }
  0xca   : > { %v260_v55 = vpop.permute.xlu1 %259  ;;  %v246_v57 = vpop.permute.xlu0 %245  ;;  %v603_v34 = vmul.f32 %v1586_v37, %v601_v51 }
  0xcb   : > { %v250_v59 = vadd.f32 %v246_v57, %v234_v52  ;;  %v273_v61 = vadd.f32 %v271_v53, %v263_v54  ;;  %v602_v54 = vmul.f32 %v1589_v39, %v601_v51 }
  0xcd   : > { %v264_v62 = vadd.f32 %v260_v55, %v250_v59  ;;  %v639_v55 = vstv %s1711_s9 }
  0xce   : > { %v284_v63 = vpop.permute.xlu1 %283  ;;  %v282_v3 = vpop.permute.xlu0 %281  ;;  %v640_v39 = vmul.f32 %v1621_v58, %v639_v55 }
  0xcf   : > { %v274_v5 = vadd.f32 %v272_v60, %v264_v62  ;;  %v287_v9 = vadd.f32 %v282_v3, %v273_v61  ;;  %v641_v60 = vmul.f32 %v1618_v56, %v639_v55  ;;  %v782_v62 = vstv %s1164_s23 }
  0xd0   : > { %v784_v56 = vmul.f32 %v1600_v45, %v782_v62 }
  0xd1   : > { %v288_v6 = vadd.f32 %v284_v63, %v274_v5 }
  0xd2   : > { %v298_v12 = vpop.permute.xlu1 %297  ;;  %v296_v10 = vpop.permute.xlu0 %295 }
  0xd3   : > { %v302_v14 = vadd.f32 %v298_v12, %v288_v6  ;;  %v301_v15 = vadd.f32 %v296_v10, %v287_v9  ;;  %v783_v9 = vmul.f32 %v1603_v47, %v782_v62  ;;  %v820_v12 = vstv %s1724_s28 }
  0xd4   : > { %v822_v10 = vmul.f32 %v1632_v2, %v820_v12 }
  0xd5   : > { %v312_v19 = vadd.f32 %v310_v13, %v302_v14  ;;  %v311_v8 = vadd.f32 %v309_v1, %v301_v15  ;;  %v821_v15 = vmul.f32 %v1635_v4, %v820_v12 }
  0xd6   : > { %v322_v17 = vpop.permute.xlu1 %321  ;;  %v320_v20 = vpop.permute.xlu0 %319 }
  0xd7   : > { %v326_v21 = vadd.f32 %v322_v17, %v312_v19  ;;  %v325_v23 = vadd.f32 %v320_v20, %v311_v8  ;;  %v496_v17 = vstv %s1732_s25 }
  0xd8   : > { %v497_v2 = vmul.f32 %v1645_v11, %v496_v17 }
  0xda   : > { %v336_v27 = vpop.permute.xlu1 %335  ;;  %v334_v30 = vpop.permute.xlu0 %333 }
  0xdb   : > { %v1695_v29 = vadd.f32 %v336_v27, %v326_v21  ;;  %v1697_v31 = vadd.f32 %v334_v30, %v325_v23  ;;  %v498_v23 = vmul.f32 %v1642_v7, %v496_v17 }
  0xdd   : > { %345 = vrot.lane.b32.xlu1 %v1695_v29, %s1366_s5  ;;  %343 = vrot.lane.b32.xlu0 %v1697_v31, %s1366_s5 }
  0xde   : > { %v434_v18 = vpop.permute.xlu1 %433  ;;  %v432_v40 = vpop.permute.xlu0 %431 }
  0xdf   : > { %v438_v41 = vadd.f32 %v434_v18, %v422_v16  ;;  %v437_v43 = vadd.f32 %v432_v40, %v421_v35 }
  0xe1   : > { %351 = vrot.lane.b32.xlu1 %v1695_v29, %s1367_s8  ;;  %349 = vrot.lane.b32.xlu0 %v1697_v31, %s1367_s8 }
  0xe2   : > { %v448_v24 = vpop.permute.xlu1 %447  ;;  %v446_v46 = vpop.permute.xlu0 %445 }
  0xe3   : > { %v452_v26 = vadd.f32 %v448_v24, %v438_v41  ;;  %v451_v48 = vadd.f32 %v446_v46, %v437_v43  ;;  %v677_v41 = vstv %s1158_s10 }
  0xe4   : > { %v679_v24 = vmul.f32 %v1660_v22, %v677_v41  ;;  %v678_v7 = vmul.f32 %v1663_v25, %v677_v41 }
  0xe5   : > { %357 = vrot.lane.b32.xlu1 %v1695_v29, %s1368_s11  ;;  %v462_v49 = vadd.f32 %v460_v42, %v452_v26  ;;  %355 = vrot.lane.b32.xlu0 %v1697_v31, %s1368_s11  ;;  %v461_v50 = vadd.f32 %v459_v44, %v451_v48 }
  0xe6   : > { %v472_v32 = vpop.permute.xlu1 %471  ;;  %v470_v52 = vpop.permute.xlu0 %469 }
  0xe7   : > { %v476_v20 = vadd.f32 %v472_v32, %v462_v49  ;;  %v475_v27 = vadd.f32 %v470_v52, %v461_v50 }
  0xe9   : > { %363 = vrot.lane.b32.xlu1 %v1695_v29, %s1369_s24  ;;  %361 = vrot.lane.b32.xlu0 %v1697_v31, %s1369_s24 }
  0xea   : > { %v615_v53 = vpop.permute.xlu1 %614  ;;  %v613_v57 = vpop.permute.xlu0 %612 }
  0xeb   : > { %v619_v59 = vadd.f32 %v615_v53, %v603_v34  ;;  %v618_v61 = vadd.f32 %v613_v57, %v602_v54  ;;  %v858_v34 = vstv %s1174_s12 }
  0xec   : > { %v860_v55 = vmul.f32 %v1674_v33, %v858_v34 }
  0xed   : > { %369 = vrot.lane.b32.xlu1 %v1695_v29, %s1370_s19  ;;  %367 = vrot.lane.b32.xlu0 %v1697_v31, %s1370_s19 }
  0xee   : > { %v629_v37 = vpop.permute.xlu1 %628  ;;  %v627_v3 = vpop.permute.xlu0 %626 }
  0xef   : > { %v633_v63 = vadd.f32 %v629_v37, %v619_v59  ;;  %v632_v0 = vadd.f32 %v627_v3, %v618_v61  ;;  %v859_v59 = vmul.f32 %v1677_v36, %v858_v34 }
  0xf1   : > { %375 = vrot.lane.b32.xlu1 %v1695_v29, %s1371_s27  ;;  %v643_v5 = vadd.f32 %v641_v60, %v633_v63  ;;  %373 = vrot.lane.b32.xlu0 %v1697_v31, %s1371_s27  ;;  %v642_v58 = vadd.f32 %v640_v39, %v632_v0 }
  0xf2   : > { %v796_v6 = vpop.permute.xlu1 %795  ;;  %v794_v13 = vpop.permute.xlu0 %793 }
  0xf3   : > { %v800_v1 = vadd.f32 %v796_v6, %v784_v56  ;;  %v799_v14 = vadd.f32 %v794_v13, %v783_v9 }
  0xf5   : > { %381 = vrot.lane.b32.xlu1 %v1695_v29, %s1372_s21  ;;  %379 = vrot.lane.b32.xlu0 %v1697_v31, %s1372_s21 }
  0xf6   : > { %v810_v45 = vpop.permute.xlu1 %809  ;;  %v808_v19 = vpop.permute.xlu0 %807 }
  0xf7   : > { %v814_v47 = vadd.f32 %v810_v45, %v800_v1  ;;  %v813_v8 = vadd.f32 %v808_v19, %v799_v14 }
  0xf9   : > { %v824_v21 = vadd.f32 %v822_v10, %v814_v47  ;;  %v823_v30 = vadd.f32 %v821_v15, %v813_v8 }
  0xfa   : > { %v486_v28 = vpop.permute.xlu1 %485  ;;  %v484_v18 = vpop.permute.xlu0 %483 }
  0xfb   : > { %v490_v16 = vadd.f32 %v486_v28, %v476_v20  ;;  %v489_v35 = vadd.f32 %v484_v18, %v475_v27 }
  0xfd   : > { %v500_v38 = vadd.f32 %v498_v23, %v490_v16  ;;  %v499_v4 = vadd.f32 %v497_v2, %v489_v35 }
  0xfe   : > { %v653_v40 = vpop.permute.xlu1 %652  ;;  %v651_v42 = vpop.permute.xlu0 %650 }
  0xff   : > { %v657_v43 = vadd.f32 %v653_v40, %v643_v5  ;;  %v656_v44 = vadd.f32 %v651_v42, %v642_v58 }
 0x102   : > { %v667_v26 = vpop.permute.xlu1 %666  ;;  %v665_v48 = vpop.permute.xlu0 %664 }
 0x103   : > { %v671_v46 = vadd.f32 %v667_v26, %v657_v43  ;;  %v670_v49 = vadd.f32 %v665_v48, %v656_v44 }
 0x105   : > { %v681_v11 = vadd.f32 %v679_v24, %v671_v46  ;;  %v680_v50 = vadd.f32 %v678_v7, %v670_v49 }
 0x106   : > { %v834_v32 = vpop.permute.xlu1 %833  ;;  %v832_v51 = vpop.permute.xlu0 %831 }
 0x107   : > { %v838_v54 = vadd.f32 %v834_v32, %v824_v21  ;;  %v837_v57 = vadd.f32 %v832_v51, %v823_v30 }
 0x10a   : > { %v510_v52 = vpop.permute.xlu1 %509  ;;  %v508_v53 = vpop.permute.xlu0 %507 }
 0x10b   : > { %v514_v37 = vadd.f32 %v510_v52, %v500_v38  ;;  %v513_v39 = vadd.f32 %v508_v53, %v499_v4 }
 0x10e   : > { %v848_v22 = vpop.permute.xlu1 %847  ;;  %v846_v25 = vpop.permute.xlu0 %845 }
 0x10f   : > { %v852_v60 = vadd.f32 %v848_v22, %v838_v54  ;;  %v851_v61 = vadd.f32 %v846_v25, %v837_v57 }
 0x111   : > { %v862_v62 = vadd.f32 %v860_v55, %v852_v60  ;;  %v861_v3 = vadd.f32 %v859_v59, %v851_v61 }
 0x112   : > { %v524_v63 = vpop.permute.xlu1 %523  ;;  %v522_v56 = vpop.permute.xlu0 %521 }
 0x113   : > { %v1754_v0 = vadd.f32 %v524_v63, %v514_v37  ;;  %v1756_v5 = vadd.f32 %v522_v56, %v513_v39 }
 0x115   : > { %533 = vrot.lane.b32.xlu1 %v1754_v0, %s1366_s5  ;;  %531 = vrot.lane.b32.xlu0 %v1756_v5, %s1366_s5 }
 0x116   : > { %v689_v33 = vpop.permute.xlu0 %688  ;;  %v691_v36 = vpop.permute.xlu1 %690 }
 0x117   : > { %v694_v9 = vadd.f32 %v689_v33, %v680_v50  ;;  %v695_v13 = vadd.f32 %v691_v36, %v681_v11 }
 0x119   : > { %539 = vrot.lane.b32.xlu1 %v1754_v0, %s1367_s8  ;;  %537 = vrot.lane.b32.xlu0 %v1756_v5, %s1367_s8 }
 0x11a   : > { %v703_v6 = vpop.permute.xlu0 %702  ;;  %v705_v12 = vpop.permute.xlu1 %704 }
 0x11b   : > { %v1770_v58 = vadd.f32 %v703_v6, %v694_v9  ;;  %v1776_v1 = vadd.f32 %v705_v12, %v695_v13 }
 0x11d   : > { %545 = vrot.lane.b32.xlu1 %v1754_v0, %s1368_s11  ;;  %543 = vrot.lane.b32.xlu0 %v1756_v5, %s1368_s11 }
 0x11e   : > { %v872_v10 = vpop.permute.xlu1 %871  ;;  %v870_v14 = vpop.permute.xlu0 %869 }
 0x11f   : > { %v876_v15 = vadd.f32 %v872_v10, %v862_v62  ;;  %v875_v47 = vadd.f32 %v870_v14, %v861_v3 }
 0x121   : > { %712 = vrot.lane.b32.xlu1 %v1770_v58, %s1366_s5  ;;  %549 = vrot.lane.b32.xlu0 %v1756_v5, %s1369_s24 }
 0x122   : > { %v886_v45 = vpop.permute.xlu1 %885  ;;  %v884_v17 = vpop.permute.xlu0 %883 }
 0x123   : > { %v1794_v19 = vadd.f32 %v886_v45, %v876_v15  ;;  %v1796_v8 = vadd.f32 %v884_v17, %v875_v47  ;;  %v1129_v47 = vld [vmem:[%s1953_s2] ss:$0 sm:$0xff] }
 0x125   : > { %551 = vrot.lane.b32.xlu1 %v1754_v0, %s1369_s24  ;;  %714 = vrot.lane.b32.xlu0 %v1776_v1, %s1366_s5 }
 0x129   : > { %720 = vrot.lane.b32.xlu1 %v1776_v1, %s1367_s8  ;;  %718 = vrot.lane.b32.xlu0 %v1770_v58, %s1367_s8 }
 0x12d   : > { %557 = vrot.lane.b32.xlu1 %v1754_v0, %s1370_s19  ;;  %555 = vrot.lane.b32.xlu0 %v1756_v5, %s1370_s19 }
 0x131   : > { %726 = vrot.lane.b32.xlu1 %v1776_v1, %s1368_s11  ;;  %724 = vrot.lane.b32.xlu0 %v1770_v58, %s1368_s11 }
 0x135   : > { %895 = vrot.lane.b32.xlu1 %v1794_v19, %s1366_s5  ;;  %893 = vrot.lane.b32.xlu0 %v1796_v8, %s1366_s5 }
 0x139   : > { %563 = vrot.lane.b32.xlu1 %v1754_v0, %s1371_s27  ;;  %561 = vrot.lane.b32.xlu0 %v1756_v5, %s1371_s27 }
 0x13d   : > { %732 = vrot.lane.b32.xlu1 %v1776_v1, %s1369_s24  ;;  %730 = vrot.lane.b32.xlu0 %v1770_v58, %s1369_s24 }
 0x141   : > { %901 = vrot.lane.b32.xlu1 %v1794_v19, %s1367_s8  ;;  %899 = vrot.lane.b32.xlu0 %v1796_v8, %s1367_s8  ;;  %s1181_s8 = sshll.u32 %s1975_s15, 4 }
 0x142   : > { %s226_s23 = scalar_lea.vmem %s1954_s3, %s1181_s8 }
 0x145   : > { %569 = vrot.lane.b32.xlu1 %v1754_v0, %s1372_s21  ;;  %567 = vrot.lane.b32.xlu0 %v1756_v5, %s1372_s21 }
 0x149   : > { %738 = vrot.lane.b32.xlu1 %v1776_v1, %s1370_s19  ;;  %736 = vrot.lane.b32.xlu0 %v1770_v58, %s1370_s19 }
 0x14d   : > { %907 = vrot.lane.b32.xlu1 %v1794_v19, %s1368_s11  ;;  %905 = vrot.lane.b32.xlu0 %v1796_v8, %s1368_s11 }
 0x14f   : > { %v346_v20 = vpop.permute.xlu1 %345  ;;  %v344_v21 = vpop.permute.xlu0 %343 }
 0x150   : > { %v387_v23 = vsel %vm385_vm0, %v1695_v29, %v346_v20  ;;  %v386_v28 = vsel %vm385_vm0, %v1697_v31, %v344_v21 }
 0x151   : > { %744 = vrot.lane.b32.xlu1 %v1776_v1, %s1371_s27  ;;  %742 = vrot.lane.b32.xlu0 %v1770_v58, %s1371_s27 }
 0x153   : > { %v352_v27 = vpop.permute.xlu1 %351  ;;  %v350_v2 = vpop.permute.xlu0 %349 }
 0x154   : > { %v390_v30 = vsel %vm388_vm1, %v387_v23, %v352_v27  ;;  %v389_v16 = vsel %vm388_vm1, %v386_v28, %v350_v2  ;;  %v1145_v23 = vld [vmem:[%s1953_s2 + $0x1] ss:$0 sm:$0xff] }
 0x155   : > { %913 = vrot.lane.b32.xlu1 %v1794_v19, %s1369_s24  ;;  %911 = vrot.lane.b32.xlu0 %v1796_v8, %s1369_s24 }
 0x157   : > { %v358_v18 = vpop.permute.xlu1 %357  ;;  %v356_v29 = vpop.permute.xlu0 %355 }
 0x158   : > { %v393_v35 = vsel %vm391_vm2, %v390_v30, %v358_v18  ;;  %v392_v38 = vsel %vm391_vm2, %v389_v16, %v356_v29 }
 0x159   : > { %750 = vrot.lane.b32.xlu1 %v1776_v1, %s1372_s21  ;;  %748 = vrot.lane.b32.xlu0 %v1770_v58, %s1372_s21 }
 0x15b   : > { %v364_v31 = vpop.permute.xlu1 %363  ;;  %v362_v4 = vpop.permute.xlu0 %361 }
 0x15c   : > { %v396_v40 = vsel %vm394_vm3, %v393_v35, %v364_v31  ;;  %v395_v41 = vsel %vm394_vm3, %v392_v38, %v362_v4 }
 0x15d   : > { %919 = vrot.lane.b32.xlu1 %v1794_v19, %s1370_s19  ;;  %917 = vrot.lane.b32.xlu0 %v1796_v8, %s1370_s19 }
 0x15f   : > { %v370_v42 = vpop.permute.xlu1 %369  ;;  %v368_v24 = vpop.permute.xlu0 %367 }
 0x160   : > { %v399_v43 = vsel %vm397_vm4, %v396_v40, %v370_v42  ;;  %v398_v44 = vsel %vm397_vm4, %v395_v41, %v368_v24 }
 0x161   : > { %925 = vrot.lane.b32.xlu1 %v1794_v19, %s1371_s27  ;;  %923 = vrot.lane.b32.xlu0 %v1796_v8, %s1371_s27 }
 0x163   : > { %v376_v26 = vpop.permute.xlu1 %375  ;;  %v374_v46 = vpop.permute.xlu0 %373 }
 0x164   : > { %v402_v7 = vsel %vm400_vm5, %v399_v43, %v376_v26  ;;  %v401_v48 = vsel %vm400_vm5, %v398_v44, %v374_v46 }
 0x165   : > { %931 = vrot.lane.b32.xlu1 %v1794_v19, %s1372_s21  ;;  %929 = vrot.lane.b32.xlu0 %v1796_v8, %s1372_s21 }
 0x167   : > { %v382_v49 = vpop.permute.xlu1 %381  ;;  %v380_v32 = vpop.permute.xlu0 %379 }
 0x168   : > { %v405_v11 = vsel %vm403_vm6, %v402_v7, %v382_v49  ;;  %v404_v50 = vsel %vm403_vm6, %v401_v48, %v380_v32 }
 0x169   : > { %v412_v35 = vmul.f32 %v1129_v47, %v405_v11  ;;  %v411_v31 = vmul.f32 %v1129_v47, %v404_v50 }
 0x187   : > { %v534_v51 = vpop.permute.xlu1 %533  ;;  %v532_v52 = vpop.permute.xlu0 %531 }
 0x188   : > { %v574_v34 = vsel %vm385_vm0, %v1754_v0, %v534_v51  ;;  %v573_v54 = vsel %vm385_vm0, %v1756_v5, %v532_v52 }
 0x18b   : > { %v540_v53 = vpop.permute.xlu1 %539  ;;  %v538_v57 = vpop.permute.xlu0 %537 }
 0x18c   : > { %v576_v55 = vsel %vm388_vm1, %v574_v34, %v540_v53  ;;  %v575_v22 = vsel %vm388_vm1, %v573_v54, %v538_v57 }
 0x18f   : > { %v546_v59 = vpop.permute.xlu1 %545  ;;  %v544_v25 = vpop.permute.xlu0 %543 }
 0x190   : > { %v578_v60 = vsel %vm391_vm2, %v576_v55, %v546_v59  ;;  %v577_v61 = vsel %vm391_vm2, %v575_v22, %v544_v25 }
 0x193   : > { %v713_v37 = vpop.permute.xlu1 %712  ;;  %v550_v62 = vpop.permute.xlu0 %549 }
 0x194   : > { %v579_v20 = vsel %vm394_vm3, %v577_v61, %v550_v62  ;;  %v754_v50 = vsel %vm385_vm0, %v1770_v58, %v713_v37  ;;  %v1161_v61 = vld [vmem:[%s1953_s2 + $0x2] ss:$0 sm:$0xff] }
 0x197   : > { %v552_v39 = vpop.permute.xlu1 %551  ;;  %v715_v63 = vpop.permute.xlu0 %714 }
 0x198   : > { %v580_v17 = vsel %vm394_vm3, %v578_v60, %v552_v39  ;;  %v755_v11 = vsel %vm385_vm0, %v1776_v1, %v715_v63 }
 0x19b   : > { %v721_v3 = vpop.permute.xlu1 %720  ;;  %v719_v0 = vpop.permute.xlu0 %718 }
 0x19c   : > { %v757_v51 = vsel %vm388_vm1, %v755_v11, %v721_v3  ;;  %v756_v52 = vsel %vm388_vm1, %v754_v50, %v719_v0 }
 0x19f   : > { %v558_v56 = vpop.permute.xlu1 %557  ;;  %v556_v33 = vpop.permute.xlu0 %555 }
 0x1a0   : > { %v582_v21 = vsel %vm397_vm4, %v580_v17, %v558_v56  ;;  %v581_v27 = vsel %vm397_vm4, %v579_v20, %v556_v33 }
 0x1a3   : > { %v727_v5 = vpop.permute.xlu1 %726  ;;  %v725_v36 = vpop.permute.xlu0 %724 }
 0x1a4   : > { %v759_v34 = vsel %vm391_vm2, %v757_v51, %v727_v5  ;;  %v758_v53 = vsel %vm391_vm2, %v756_v52, %v725_v36 }
 0x1a7   : > { %v896_v6 = vpop.permute.xlu1 %895  ;;  %v894_v9 = vpop.permute.xlu0 %893 }
 0x1a8   : > { %v936_v60 = vsel %vm385_vm0, %v1794_v19, %v896_v6  ;;  %v935_v62 = vsel %vm385_vm0, %v1796_v8, %v894_v9 }
 0x1ab   : > { %v564_v12 = vpop.permute.xlu1 %563  ;;  %v562_v13 = vpop.permute.xlu0 %561 }
 0x1ac   : > { %v584_v28 = vsel %vm400_vm5, %v582_v21, %v564_v12  ;;  %v583_v2 = vsel %vm400_vm5, %v581_v27, %v562_v13  ;;  %v1177_v12 = vld [vmem:[%s1953_s2 + $0x3] ss:$0 sm:$0xff] }
 0x1af   : > { %v733_v10 = vpop.permute.xlu1 %732  ;;  %v731_v14 = vpop.permute.xlu0 %730 }
 0x1b0   : > { %v761_v54 = vsel %vm394_vm3, %v759_v34, %v733_v10  ;;  %v760_v1 = vsel %vm394_vm3, %v758_v53, %v731_v14 }
 0x1b3   : > { %v902_v45 = vpop.permute.xlu1 %901  ;;  %v900_v15 = vpop.permute.xlu0 %899 }
 0x1b4   : > { %v938_v39 = vsel %vm388_vm1, %v936_v60, %v902_v45  ;;  %v937_v19 = vsel %vm388_vm1, %v935_v62, %v900_v15 }
 0x1b7   : > { %v570_v30 = vpop.permute.xlu1 %569  ;;  %v568_v18 = vpop.permute.xlu0 %567 }
 0x1b8   : > { %v586_v16 = vsel %vm403_vm6, %v584_v28, %v570_v30  ;;  %v585_v38 = vsel %vm403_vm6, %v583_v2, %v568_v18 }
 0x1b9   : > { %v593_v29 = vmul.f32 %v1145_v23, %v586_v16  ;;  %v592_v40 = vmul.f32 %v1145_v23, %v585_v38 }
 0x1bb   : > { %v595_v4 = vadd.f32 %v593_v29, %v412_v35  ;;  %v739_v41 = vpop.permute.xlu1 %738  ;;  %v594_v42 = vadd.f32 %v592_v40, %v411_v31  ;;  %v737_v43 = vpop.permute.xlu0 %736 }
 0x1bc   : > { %v763_v57 = vsel %vm397_vm4, %v761_v54, %v739_v41  ;;  %v762_v58 = vsel %vm397_vm4, %v760_v1, %v737_v43 }
 0x1bf   : > { %v908_v24 = vpop.permute.xlu1 %907  ;;  %v906_v44 = vpop.permute.xlu0 %905 }
 0x1c0   : > { %v940_v0 = vsel %vm391_vm2, %v938_v39, %v908_v24  ;;  %v939_v33 = vsel %vm391_vm2, %v937_v19, %v906_v44 }
 0x1c3   : > { %v745_v26 = vpop.permute.xlu1 %744  ;;  %v743_v7 = vpop.permute.xlu0 %742 }
 0x1c4   : > { %v765_v59 = vsel %vm400_vm5, %v763_v57, %v745_v26  ;;  %v764_v25 = vsel %vm400_vm5, %v762_v58, %v743_v7 }
 0x1c7   : > { %v914_v46 = vpop.permute.xlu1 %913  ;;  %v912_v48 = vpop.permute.xlu0 %911 }
 0x1c8   : > { %v942_v5 = vsel %vm394_vm3, %v940_v0, %v914_v46  ;;  %v941_v6 = vsel %vm394_vm3, %v939_v33, %v912_v48 }
 0x1cb   : > { %v751_v49 = vpop.permute.xlu1 %750  ;;  %v749_v32 = vpop.permute.xlu0 %748 }
 0x1cc   : > { %v767_v37 = vsel %vm403_vm6, %v765_v59, %v751_v49  ;;  %v766_v63 = vsel %vm403_vm6, %v764_v25, %v749_v32 }
 0x1cd   : > { %v774_v36 = vmul.f32 %v1161_v61, %v767_v37  ;;  %v773_v8 = vmul.f32 %v1161_v61, %v766_v63 }
 0x1cf   : > { %v920_v55 = vpop.permute.xlu1 %919  ;;  %v918_v22 = vpop.permute.xlu0 %917  ;;  %v776_v47 = vadd.f32 %v774_v36, %v595_v4  ;;  %v775_v23 = vadd.f32 %v773_v8, %v594_v42 }
 0x1d0   : > { %v944_v9 = vsel %vm397_vm4, %v942_v5, %v920_v55  ;;  %v943_v13 = vsel %vm397_vm4, %v941_v6, %v918_v22 }
 0x1d3   : > { %v926_v3 = vpop.permute.xlu1 %925  ;;  %v924_v56 = vpop.permute.xlu0 %923 }
 0x1d4   : > { %v946_v10 = vsel %vm400_vm5, %v944_v9, %v926_v3  ;;  %v945_v45 = vsel %vm400_vm5, %v943_v13, %v924_v56 }
 0x1d7   : > { %v932_v14 = vpop.permute.xlu1 %931  ;;  %v930_v17 = vpop.permute.xlu0 %929 }
 0x1d8   : > { %v948_v15 = vsel %vm403_vm6, %v946_v10, %v932_v14  ;;  %v947_v21 = vsel %vm403_vm6, %v945_v45, %v930_v17 }
 0x1d9   : > { %v955_v20 = vmul.f32 %v1177_v12, %v948_v15  ;;  %v954_v27 = vmul.f32 %v1177_v12, %v947_v21 }
 0x1db   : > { %v957_v28 = vadd.f32 %v955_v20, %v776_v47  ;;  %v956_v30 = vadd.f32 %v954_v27, %v775_v23 }
 0x1dd   : > { %961 = vst.msk [vmem:[%s226_s23 + $0x8] sm:$0x3f] %vm960_vm7, %v957_v28 }
 0x1de   : > { %959 = vst.msk [vmem:[%s226_s23] sm:$0xff] %vm958_vm8, %v956_v30 }
 0x1df PF: > { %s17_s17 = sadd.s32 1, %s1358_s17   ;;  %s1967_s12 = smov %s1342_s13 }
 0x1e0   : > { %p14_p11 = scmp.ge.s32.totalorder %s17_s17, 4   ;;  %s1968_s13 = smov %s1346_s14 }
 0x1e1   : > { %s1969_s14 = smov %s1506_s22  ;;  %s1970_s15 = smov %s1354_s16 }
 0x1e2   : > { %s1971_s16 = smov %s1973_s30  ;;  %16 = sbr.rel (!%p14_p11) target bundleno = 5 (0x5), region = 89 }
 0x1e9   :  { %991 = vsyncpa [#allocation3], 1 }
 0x1ea   :  { %993 = vsyncpa [#allocation3 + $0x1], 1 }
 0x1eb   :  { %994 = vsyncpa [#allocation4], 1 }
 0x1ec   :  { %996 = vsyncpa [#allocation4 + $0x1], 1 }

</bundles_post_ra>
